<compile_context>
chip_gen: v7x
topology: tpu7x:2x2x1
jax: 0.10.0
libtpu: 0.0.40
codegen_flags: <defaults>
</compile_context>

<pallas_src>
import jax
import jax.numpy as jnp
import numpy as np
from jax.experimental import pallas as pl
from jax.experimental.pallas import tpu as pltpu


def nlinear_kernel(w_ref, b_ref, x_ref, o_ref):
    # w_ref: [CT, K] fused effective weight (tiny, VMEM-resident: block (0,0))
    # b_ref: [1, K]  fused effective bias
    # x_ref: [TB, CT] natural-layout batch tile (contiguous HBM read)
    # o_ref: [TB, K]  final-layout output tile (no wrapper-side transpose)
    acc = jnp.dot(x_ref[...], w_ref[...], preferred_element_type=jnp.float32)
    o_ref[...] = (acc + b_ref[...]).astype(o_ref.dtype)


def _fold_weights(params, C, individual):
    """Fold the per-channel Linear stack and the final Linear into one GEMM."""
    w_ind, b_ind = params["w_ind"], params["b_ind"]      # [C,N,T], [C,N]
    w_fin, b_fin = params["w_fin"], params["b_fin"]      # [K,N*C], [K]
    K = b_fin.shape[0]
    N = w_fin.shape[1] // C
    T = w_ind.shape[-1]
    if not individual:
        # shared Linear across channels == identical per-channel weights
        # (shared parameters expected in w_ind[:1] / b_ind[:1])
        w_ind = jnp.broadcast_to(w_ind[:1], (C,) + w_ind.shape[1:])
        b_ind = jnp.broadcast_to(b_ind[:1], (C,) + b_ind.shape[1:])
    # w_fin_k[c, n, k] = w_fin[k, n*C + c]   (torch .view flatten order: n*C+c)
    w_fin_k = jnp.transpose(w_fin.reshape(K, N, C), (2, 1, 0))          # [C,N,K]
    # W_eff[t*C+c, k] = sum_n w_ind[c,n,t] * w_fin_k[c,n,k]
    w_eff = jnp.einsum("cnt,cnk->tck", w_ind, w_fin_k).reshape(T * C, K)
    b_eff = (b_fin + jnp.einsum("cn,cnk->k", b_ind, w_fin_k))[None, :]  # [1,K]
    return w_eff, b_eff


def nlinear_forward(x, skl_data, params, *, individual=True,
                    batch_tile=4096, min_pallas_batch=1024,
                    force_pallas=False):
    """NLinear forward.  x: [B, T, C].  skl_data is unused (as in the torch code)."""
    del skl_data  # unused by the reference forward
    B, T, C = x.shape
    w_eff, b_eff = _fold_weights(params, C, individual)    # [CT,K], [1,K]
    CT, K = w_eff.shape
    x_flat = x.reshape(B, CT)                              # natural layout, no transpose

    if B < min_pallas_batch and not force_pallas:
        # Launch / per-grid-step overhead dominates at tiny batch:
        # a plain fused XLA GEMM is strictly faster there.
        return x_flat @ w_eff + b_eff

    # ---- Batch tile selection -------------------------------------------
    if B <= 128:
        TB = B                                  # single block == full batch dim
    else:
        # >= 2 balanced, 128-aligned grid steps so v7x's two TensorCores
        # both get work; cap at batch_tile (VMEM budget: ~TB*512 B per buffer).
        TB = min(batch_tile, max(128, ((pl.cdiv(B, 2) + 127) // 128) * 128))
    grid = (pl.cdiv(B, TB),)

    cost = pl.CostEstimate(
        flops=2 * B * CT * K,
        bytes_accessed=(B * CT + B * K + CT * K + K) * 4,
        transcendentals=0,
    )

    out = pl.pallas_call(
        nlinear_kernel,
        out_shape=jax.ShapeDtypeStruct((B, K), x.dtype),
        grid_spec=pltpu.PrefetchScalarGridSpec(
            num_scalar_prefetch=0,
            grid=grid,
            in_specs=[
                pl.BlockSpec((CT, K), lambda i: (0, 0)),    # fused weight: resident
                pl.BlockSpec((1, K), lambda i: (0, 0)),     # fused bias: resident
                pl.BlockSpec((TB, CT), lambda i: (i, 0)),   # contiguous x tile
            ],
            out_specs=pl.BlockSpec((TB, K), lambda i: (i, 0)),
        ),
        compiler_params=pltpu.CompilerParams(
            dimension_semantics=("parallel",),
        ),
        cost_estimate=cost,
    )(w_eff, b_eff, x_flat)
    return out


def nlinear_ref(x, params):
    """Pure-JAX reference mirroring the PyTorch forward (individual=True)."""
    B, T, C = x.shape
    mid = jnp.stack(
        [x[:, :, c] @ params["w_ind"][c].T + params["b_ind"][c] for c in range(C)],
        axis=-1,
    )  # [B, N, C]
    flat = mid.reshape(B, -1)                      # (n, c) flatten == torch .view
    return flat @ params["w_fin"].T + params["b_fin"]


def init_params(key, acc_frames, num_class, channels):
    ks = jax.random.split(key, 4)
    s_ind = 1.0 / np.sqrt(acc_frames)
    s_fin = 1.0 / np.sqrt(num_class * channels)
    return {
        "w_ind": jax.random.uniform(ks[0], (channels, num_class, acc_frames),
                                    jnp.float32, -s_ind, s_ind),
        "b_ind": jax.random.uniform(ks[1], (channels, num_class),
                                    jnp.float32, -s_ind, s_ind),
        "w_fin": jax.random.uniform(ks[2], (num_class, num_class * channels),
                                    jnp.float32, -s_fin, s_fin),
        "b_fin": jax.random.uniform(ks[3], (num_class,),
                                    jnp.float32, -s_fin, s_fin),
    }


if __name__ == "__main__":
    num_class, channels, acc_frames = 9, 3, 16
    key = jax.random.PRNGKey(0)

    # --- Small module-consistent shapes (B=2); force the Pallas path so the
    #     kernel itself is exercised, then also check the small-batch fallback.
    B = 2
    kx, kskl, kp = jax.random.split(key, 3)
    x = jax.random.normal(kx, (B, acc_frames, channels), jnp.float32)
    skl_data = jax.random.normal(kskl, (B, acc_frames, channels), jnp.float32)  # unused
    params = init_params(kp, acc_frames, num_class, channels)

    out = jax.block_until_ready(
        nlinear_forward(x, skl_data, params, individual=True, force_pallas=True))
    expected = nlinear_ref(x, params)
    assert out.shape == (B, num_class), out.shape
    np.testing.assert_allclose(np.asarray(out), np.asarray(expected),
                               rtol=1e-4, atol=1e-4)

    out_fb = jax.block_until_ready(
        nlinear_forward(x, skl_data, params, individual=True))  # fallback GEMM path
    np.testing.assert_allclose(np.asarray(out_fb), np.asarray(expected),
                               rtol=1e-4, atol=1e-4)

    # --- Larger batch exercising the multi-tile grid incl. a ragged last tile
    #     (B=300, TB=128 -> 3 grid steps).
    B2 = 300
    kx2, kp2 = jax.random.split(jax.random.PRNGKey(1), 2)
    x2 = jax.random.normal(kx2, (B2, acc_frames, channels), jnp.float32)
    params2 = init_params(kp2, acc_frames, num_class, channels)
    out2 = jax.block_until_ready(
        nlinear_forward(x2, None, params2, individual=True,
                        force_pallas=True, batch_tile=128))
    np.testing.assert_allclose(np.asarray(out2), np.asarray(nlinear_ref(x2, params2)),
                               rtol=1e-4, atol=1e-4)

    # TODO(synk): seq_last / skl_data are computed-but-unused in the reference
    # forward, so they are intentionally not materialized in the kernel.
    print("KERNEL_OK")
</pallas_src>

<mosaic_0001>
module attributes {stable_mosaic.version = 11 : i64} {
  func.func @nlinear_kernel(%arg0: i32, %arg1: memref<48x9xf32, #tpu.memory_space<vmem>>, %arg2: memref<1x9xf32, #tpu.memory_space<vmem>>, %arg3: memref<2x48xf32, #tpu.memory_space<vmem>>, %arg4: memref<2x9xf32, #tpu.memory_space<vmem>>) attributes {dimension_semantics = [#tpu.dimension_semantics<parallel>], iteration_bounds = array<i64: 1>, scalar_prefetch = 0 : i64, scratch_operands = 0 : i64, tpu.core_type = #tpu.core_type<tc>, window_params = [{pipeline_mode = #tpu.pipeline_mode<synchronous>, transform_indices = @transform_0, window_bounds = array<i64: 48, 9>}, {pipeline_mode = #tpu.pipeline_mode<synchronous>, transform_indices = @transform_1, window_bounds = array<i64: 1, 9>}, {transform_indices = @transform_2, window_bounds = array<i64: 2, 48>}, {transform_indices = @transform_3, window_bounds = array<i64: 2, 9>}]} {
    %c0 = arith.constant 0 : index
    %c0_0 = arith.constant 0 : index
    %0 = vector.load %arg3[%c0, %c0_0] : memref<2x48xf32, #tpu.memory_space<vmem>>, vector<2x48xf32>
    %c0_1 = arith.constant 0 : index
    %c0_2 = arith.constant 0 : index
    %1 = vector.load %arg1[%c0_1, %c0_2] : memref<48x9xf32, #tpu.memory_space<vmem>>, vector<48x9xf32>
    %cst = arith.constant dense<0.000000e+00> : vector<2x9xf32>
    %2 = tpu.matmul %0, %1, %cst {dimension_numbers = #tpu.dot_dimension_numbers<[1], [0], [0], [1], [0, 0, 1, 1], [], []>} : vector<2x48xf32>, vector<48x9xf32>, vector<2x9xf32> -> vector<2x9xf32>
    %c0_3 = arith.constant 0 : index
    %c0_4 = arith.constant 0 : index
    %3 = vector.load %arg2[%c0_3, %c0_4] : memref<1x9xf32, #tpu.memory_space<vmem>>, vector<1x9xf32>
    %4 = vector.broadcast %3 : vector<1x9xf32> to vector<2x9xf32>
    %5 = arith.addf %2, %4 : vector<2x9xf32>
    %c0_5 = arith.constant 0 : index
    %c0_6 = arith.constant 0 : index
    %6 = vector.load %arg4[%c0_5, %c0_6] : memref<2x9xf32, #tpu.memory_space<vmem>>, vector<2x9xf32>
    tpu.vector_store %arg4[%c0_5, %c0_6], %5 {strides = array<i32>} : memref<2x9xf32, #tpu.memory_space<vmem>>, vector<2x9xf32>,
    return
  }
  func.func @transform_0(%arg0: i32) -> (i32, i32) {
    %c0_i32 = arith.constant 0 : i32
    %c0_i32_0 = arith.constant 0 : i32
    %c0_i32_1 = arith.constant 0 : i32
    return %c0_i32, %c0_i32_0 : i32, i32
  }
  func.func @transform_1(%arg0: i32) -> (i32, i32) {
    %c0_i32 = arith.constant 0 : i32
    %c0_i32_0 = arith.constant 0 : i32
    %c0_i32_1 = arith.constant 0 : i32
    return %c0_i32, %c0_i32_0 : i32, i32
  }
  func.func @transform_2(%arg0: i32) -> (i32, i32) {
    %c0_i32 = arith.constant 0 : i32
    %c0_i32_0 = arith.constant 0 : i32
    return %arg0, %c0_i32 : i32, i32
  }
  func.func @transform_3(%arg0: i32) -> (i32, i32) {
    %c0_i32 = arith.constant 0 : i32
    %c0_i32_0 = arith.constant 0 : i32
    return %arg0, %c0_i32 : i32, i32
  }
}

</mosaic_0001>

<bundles_post_ra>
// kernel: tpu_custom_call.1
= control target key start
LH: loop header
LB: loop body
LE: loop exit
PB: predicated region body
PF: predicated region fallthrough
CT: control target
= control target key end

     0   :  { %v180_v3 = vmov 0.0|0.0   ;;  %vm181_vm0 = vmmov 0   ;;  %v182_v6 = vmov 0.0   ;;  %s240_s0 = inlined_call_operand.vmem [shape: f32[48,9], index: 0, kind: input, shape index: {}]   ;;  %s241_s1 = inlined_call_operand.vmem [shape: f32[1,9], index: 1, kind: input, shape index: {}]   ;;  %s242_s2 = inlined_call_operand.vmem [shape: f32[2,48], index: 2, kind: input, shape index: {}]   ;;  %s243_s3 = inlined_call_operand.hbm [shape: f32[2,9], index: 3, kind: output, shape index: {}]  }
   0x1   :  { %v16_v0 = vld [vmem:[%s240_s0] sm:$0xff]  ;;  %v17_v1 = vld [vmem:[%s240_s0 + $0x8] sm:$0xff]  ;;  %v18_v2 = vld [vmem:[%s240_s0 + $0x10] sm:$0xff]  ;;  %143 = vmatprep.subr.bf16.mxu0 %v180_v3  ;;  %140 = vmatprep.mubr.msk.f32.mxu0 %vm181_vm0, %v182_v6 }
   0x2   :  { %v144_v4 = vpack.c.bf16 %v17_v1, %v16_v0  ;;  %v19_v5 = vld [vmem:[%s240_s0 + $0x18] sm:$0xff] }
   0x3   :  { %8 = vsyncpa [#allocation3], 0  ;;  %v147_v7 = vpack.c.bf16 %v19_v5, %v18_v2  ;;  %v20_v8 = vld [vmem:[%s240_s0 + $0x20] sm:$0xff]  ;;  %v21_v9 = vld [vmem:[%s240_s0 + $0x28] sm:$0xff]  ;;  %vm29_vm1 = vcmask 392192   ;;  %s183_s28 = smov [#allocation2]  }
   0x4   :  { %145 = vmatpush3.bf16.msra.mxu0 %v144_v4  ;;  %v150_v10 = vpack.c.bf16 %v21_v9, %v20_v8  ;;  %v15_v11 = vld [vmem:[%s242_s2] sm:$0x3]  ;;  %s111_s29 = sshll.u32 %s183_s28, 4  ;;  %vm103_vm2 = vcmask 66560   ;;  %s112_s29 = int_to_ptr.vmem [resolvable:$true] %s111_s29 }
   0x5   :  { %146 = vmatprep.subr.bf16.mxu0 %v180_v3  ;;  %v119_v12 = vld [vmem:[%s241_s1] ss:$0 sm:$0xff]  ;;  %s156_s0 = scalar_lea.vmem %s112_s29, 32  ;;  %p161_p1 = scmp.lt.s32.totalorder %s112_s29, %s112_s29 }
   0x6   :  { %p157_p0 = scmp.ne.s32.totalorder %s112_s29, %s156_s0  ;;  %p162_p2 = scmp.lt.s32.totalorder %s156_s0, %s156_s0 }
   0x8   :  { %148 = vmatpush3.bf16.msra.mxu0 %v147_v7  ;;  %p163_p3 = por %p162_p2, %p161_p1 }
   0x9   :  { %149 = vmatprep.subr.bf16.mxu0 %v180_v3 }
   0xa   :  { %p164_p4 = pnand %p163_p3, %p157_p0 }
   0xc   :  { %151 = vmatpush3.bf16.msra.mxu0 %v150_v10 }
   0xf   :  { %141 = vmatmul.mubr.msk.f32.vlgmr.msra.gmra.mrb[0].mxu0 %vm29_vm1, %v15_v11 }
  0xe2   :  { %v99_v13 = vpop.f32.mrb[0].mxu0 }
  0xe3   :  { %v100_v14 = vadd.f32 %v119_v12, %v99_v13  ;;  %v142_v15 = vpop.f32.mrb[1].mxu0 }
  0xe5   :  { %104 = vst.msk [vmem:[#allocation2] sm:$0x3] %vm103_vm2, %v100_v14 }
  0xe6   :  { %167 = shalt.err (!%p164_p4)
}
  0xe7   :  { %s168_s4 = scalar_lea.hbm %s243_s3, 32 }
  0xe8   :  { %p169_p5 = scmp.ne.s32.totalorder %s243_s3, %s168_s4  ;;  %p172_p6 = scmp.lt.u32.totalorder %s168_s4, %s243_s3 }
  0xea   :  { %p174_p7 = pnand %p172_p6, %p169_p5 }
  0xec   :  { %177 = shalt.err (!%p174_p7)
}
  0xed   :  { %114 = dma.vmem_to_hbm [thread:$0]  %s112_s29, 32, %s243_s3, [#allocation3]  }
  0xee   :  { %178 = dma.done.wait [#allocation3], 32  }
  0xef   :  { %179 = vsyncadd [#allocation3], 4294967264 }
  0xf0   :  { %118 = vsyncpa [#allocation3], 1 }

</bundles_post_ra>
